<compile_context>
chip_gen: v6e
topology: v6e:2x2x1
jax: 0.10.0
libtpu: 0.0.40
codegen_flags: <defaults>
</compile_context>

<pallas_src>
import functools

import jax
import jax.numpy as jnp
from jax import lax
from jax.experimental import pallas as pl
from jax.experimental.pallas import tpu as pltpu


def _round_up(x: int, m: int) -> int:
    return ((x + m - 1) // m) * m


def _hard_mining_tile_kernel(x_ref, wg_ref, wsum_ref, cnt_ref, out_ref, *, n_total, tm):
    """One row tile -> one partial loss sum.

    x_ref, wg_ref : (tm, d)  anchor embeddings / gathered class rows (native dtype)
    wsum_ref      : (1, d)   f32 sum_j w[targets[j]] over the whole batch (VMEM-resident)
    cnt_ref       : (tm, 1)  f32 positive counts  #{j : t_j == t_i} (diagonal included)
    out_ref       : (8, 128) f32 partial-sum slot for this tile (value replicated)
    """
    # Upcast AFTER the DMA so bf16/fp16 inputs stream at half the HBM bytes
    # (v5e has no bf16 VALU, so the explicit f32 upcast is required there).
    x = x_ref[...].astype(jnp.float32)                                     # (tm, d)
    wg = wg_ref[...].astype(jnp.float32)                                   # (tm, d)
    wsum = wsum_ref[...]                                                   # (1, d)
    pos_cnt = cnt_ref[...]                                                 # (tm, 1)

    # Mean over positives: every positive similarity of row i is x_i . w[t_i].
    pos_mean = jnp.sum(x * wg, axis=1, keepdims=True)                      # (tm, 1)
    # Sum over negatives, computed directly (avoids row_sum - cnt*pos_mean
    # cancellation): sum_d x[i,d] * (wsum[d] - cnt_i * wg[i,d]).
    neg_sum = jnp.sum(x * (wsum - pos_cnt * wg), axis=1, keepdims=True)    # (tm, 1)
    neg_cnt = jnp.float32(n_total) - pos_cnt                               # (tm, 1)
    per_row = (1.0 - pos_mean) + neg_sum / neg_cnt                         # (tm, 1)

    # Mask rows past n (the partial tail block reads unspecified values; jnp.where
    # is a select, so NaN garbage in the unselected branch cannot propagate).
    row_ids = lax.broadcasted_iota(jnp.int32, (tm, 1), 0) + pl.program_id(0) * tm
    per_row = jnp.where(row_ids < n_total, per_row, 0.0)

    # Per-tile partial sum, written to a full (8, 128) f32 vreg tile so the store
    # is lane-dense and unmasked (keeps the grid axis "parallel").
    out_ref[...] = jnp.broadcast_to(jnp.sum(per_row, keepdims=True), (8, 128))


def hard_mining_loss(inputs, targets, w, *, block_rows=512):
    """HardMiningLoss forward.

    inputs : (n, d) float (f32 / bf16) anchor embeddings
    targets: (n,)   int class ids
    w      : (num_classes, d) float class-centre matrix
    """
    n, d = inputs.shape
    num_classes = w.shape[0]
    targets = targets.astype(jnp.int32)

    # O(n + C*d) wrapper glue (f32 histogram is exact below 2**24 per class):
    counts = jnp.zeros((num_classes,), jnp.float32).at[targets].add(1.0)
    pos_cnt = counts[targets].reshape(n, 1)                                # (n, 1) f32
    wsum = jnp.einsum("c,cd->d", counts, w.astype(jnp.float32),
                      precision=lax.Precision.HIGHEST).reshape(1, d)       # (1, d) f32
    # Gather stays in the wrapper (see header note) but in the NATIVE dtype so a
    # bf16 w streams at half the bytes; the kernel upcasts after the DMA.
    wg = jnp.take(w, targets, axis=0)                                      # (n, d)
    x = inputs

    # ---- row-tile sizing --------------------------------------------------
    block_rows = max(8, (int(block_rows) // 8) * 8)
    itemsize = jnp.dtype(x.dtype).itemsize
    row_bytes = 2 * d * itemsize + 4              # one row of x + wg (+ pos_cnt)
    # Live-VMEM target for the 2-deep pipelined input tiles: conservative enough
    # for v5e's 16 MiB scoped default and v7x's 64 MiB physical VMEM.  For very
    # large d this clamp shrinks tm (a d-tiled "arbitrary" axis + accumulator
    # would keep tm large; not needed at these sizes).
    tile_budget = 24 << 20
    tm_vmem = max(8, ((tile_budget // (2 * row_bytes)) // 8) * 8)
    if n <= 2 * block_rows:
        # >= 2 tiles whenever possible so ("parallel",) engages both v7x TCs.
        tm = _round_up(int(pl.cdiv(n, 2)), 8)
    else:
        tm = block_rows
    tm = min(tm, tm_vmem)
    if n < 8:                                     # sub-sublane batch: one full block
        tm = n
    tm = max(int(tm), 1)
    num_tiles = int(pl.cdiv(n, tm))

    # Scoped-VMEM limit: 2 pipeline buffers per streamed input + resident wsum +
    # output slots + slack; capped at 48 MiB so it stays valid on v7x.
    vmem_need = 2 * tm * row_bytes + 2 * d * 4 + 2 * 8 * 128 * 4
    vmem_limit = int(min(max(vmem_need + (4 << 20), 32 << 20), 48 << 20))

    kernel = functools.partial(_hard_mining_tile_kernel, n_total=n, tm=tm)
    partials = pl.pallas_call(
        kernel,
        out_shape=jax.ShapeDtypeStruct((num_tiles * 8, 128), jnp.float32),
        grid_spec=pltpu.PrefetchScalarGridSpec(
            num_scalar_prefetch=0,
            grid=(num_tiles,),
            in_specs=[
                pl.BlockSpec((tm, d), lambda i: (i, 0)),   # x row tile (native dtype)
                pl.BlockSpec((tm, d), lambda i: (i, 0)),   # gathered class rows (native dtype)
                pl.BlockSpec((1, d), lambda i: (0, 0)),    # wsum, VMEM-resident
                pl.BlockSpec((tm, 1), lambda i: (i, 0)),   # positive counts
            ],
            out_specs=pl.BlockSpec((8, 128), lambda i: (i, 0)),
        ),
        compiler_params=pltpu.CompilerParams(
            # Row tiles are independent: megacore-parallel on v7x, harmless on
            # single-TC v5e/v6e.
            dimension_semantics=("parallel",),
            vmem_limit_bytes=vmem_limit,
        ),
    )(x, wg, wsum, pos_cnt)

    # Tiny final reduce: one value per tile (each (8,128) slot is replicated).
    per_tile = partials.reshape(num_tiles, 8, 128)[:, 0, 0]
    return jnp.sum(per_tile) / jnp.float32(n)


def _reference_loss(inputs, targets, w):
    """Pure-JAX mirror of the PyTorch forward (materializes the (n, n) sim matrix)."""
    wg = jnp.take(w, targets, axis=0)
    sim = jnp.dot(inputs, wg.T, precision=lax.Precision.HIGHEST)
    pos = targets[:, None] == targets[None, :]
    neg = ~pos
    pos_mean = jnp.where(pos, sim, 0.0).sum(1) / pos.sum(1)
    neg_mean = jnp.where(neg, sim, 0.0).sum(1) / neg.sum(1)
    return jnp.mean((1.0 - pos_mean) + neg_mean)


if __name__ == "__main__":
    key = jax.random.PRNGKey(0)
    k_x, k_w = jax.random.split(key)

    n = 10             # batch size (not a multiple of 8 -> exercises the tail mask)
    d = 32             # embedding dim
    num_classes = 5

    inputs = jax.random.normal(k_x, (n, d), dtype=jnp.float32)
    w = jax.random.normal(k_w, (num_classes, d), dtype=jnp.float32)
    # Each class appears twice -> every anchor has positives (incl. itself) and negatives.
    targets = jnp.array([0, 0, 1, 1, 2, 2, 3, 3, 4, 4], dtype=jnp.int32)

    loss = hard_mining_loss(inputs, targets, w)
    jax.block_until_ready(loss)

    ref = _reference_loss(inputs, targets, w)
    assert jnp.allclose(loss, ref, atol=1e-4, rtol=1e-4), (loss, ref)
    print("KERNEL_OK")
</pallas_src>

<mosaic_0001>
module attributes {stable_mosaic.version = 11 : i64} {
  func.func @_hard_mining_tile_kernel(%arg0: i32, %arg1: memref<8x32xf32, #tpu.memory_space<vmem>>, %arg2: memref<8x32xf32, #tpu.memory_space<vmem>>, %arg3: memref<1x32xf32, #tpu.memory_space<vmem>>, %arg4: memref<8x1xf32, #tpu.memory_space<vmem>>, %arg5: memref<8x128xf32, #tpu.memory_space<vmem>>) attributes {dimension_semantics = [#tpu.dimension_semantics<parallel>], iteration_bounds = array<i64: 2>, scalar_prefetch = 0 : i64, scratch_operands = 0 : i64, tpu.core_type = #tpu.core_type<tc>, window_params = [{transform_indices = @transform_0, window_bounds = array<i64: 8, 32>}, {transform_indices = @transform_1, window_bounds = array<i64: 8, 32>}, {pipeline_mode = #tpu.pipeline_mode<synchronous>, transform_indices = @transform_2, window_bounds = array<i64: 1, 32>}, {transform_indices = @transform_3, window_bounds = array<i64: 8, 1>}, {transform_indices = @transform_4, window_bounds = array<i64: 8, 128>}]} {
    %c0 = arith.constant 0 : index
    %c0_0 = arith.constant 0 : index
    %0 = vector.load %arg1[%c0, %c0_0] : memref<8x32xf32, #tpu.memory_space<vmem>>, vector<8x32xf32>
    %c0_1 = arith.constant 0 : index
    %c0_2 = arith.constant 0 : index
    %1 = vector.load %arg2[%c0_1, %c0_2] : memref<8x32xf32, #tpu.memory_space<vmem>>, vector<8x32xf32>
    %c0_3 = arith.constant 0 : index
    %c0_4 = arith.constant 0 : index
    %2 = vector.load %arg3[%c0_3, %c0_4] : memref<1x32xf32, #tpu.memory_space<vmem>>, vector<1x32xf32>
    %c0_5 = arith.constant 0 : index
    %c0_6 = arith.constant 0 : index
    %3 = vector.load %arg4[%c0_5, %c0_6] : memref<8x1xf32, #tpu.memory_space<vmem>>, vector<8x1xf32>
    %4 = arith.mulf %0, %1 : vector<8x32xf32>
    %cst = arith.constant dense<0.000000e+00> : vector<8xf32>
    %5 = vector.multi_reduction <add>, %4, %cst [1] : vector<8x32xf32> to vector<8xf32>
    %6 = vector.shape_cast %5 : vector<8xf32> to vector<8x1xf32>
    %7 = vector.broadcast %3 : vector<8x1xf32> to vector<8x32xf32>
    %8 = arith.mulf %7, %1 : vector<8x32xf32>
    %9 = vector.broadcast %2 : vector<1x32xf32> to vector<8x32xf32>
    %10 = arith.subf %9, %8 : vector<8x32xf32>
    %11 = arith.mulf %0, %10 : vector<8x32xf32>
    %cst_7 = arith.constant dense<0.000000e+00> : vector<8xf32>
    %12 = vector.multi_reduction <add>, %11, %cst_7 [1] : vector<8x32xf32> to vector<8xf32>
    %13 = vector.shape_cast %12 : vector<8xf32> to vector<8x1xf32>
    %cst_8 = arith.constant 1.000000e+01 : f32
    %14 = vector.broadcast %cst_8 : f32 to vector<8x1xf32>
    %15 = arith.subf %14, %3 : vector<8x1xf32>
    %cst_9 = arith.constant 1.000000e+00 : f32
    %16 = vector.broadcast %cst_9 : f32 to vector<8x1xf32>
    %17 = arith.subf %16, %6 : vector<8x1xf32>
    %18 = arith.divf %13, %15 : vector<8x1xf32>
    %19 = arith.addf %17, %18 : vector<8x1xf32>
    %20 = tpu.iota {dimensions = array<i32: 0>} : vector<8x1xi32>
    %c8_i32 = arith.constant 8 : i32
    %21 = arith.muli %arg0, %c8_i32 : i32
    %22 = vector.broadcast %21 : i32 to vector<8x1xi32>
    %23 = arith.addi %20, %22 : vector<8x1xi32>
    %c10_i32 = arith.constant 10 : i32
    %24 = vector.broadcast %c10_i32 : i32 to vector<8x1xi32>
    %25 = arith.cmpi slt, %23, %24 : vector<8x1xi32>
    %cst_10 = arith.constant 0.000000e+00 : f32
    %26 = vector.broadcast %cst_10 : f32 to vector<8x1xf32>
    %27 = arith.select %25, %19, %26 : vector<8x1xi1>, vector<8x1xf32>
    %28 = vector.shape_cast %27 : vector<8x1xf32> to vector<1x8x1xf32>
    %cst_11 = arith.constant dense<0.000000e+00> : vector<1xf32>
    %29 = vector.multi_reduction <add>, %28, %cst_11 [1, 2] : vector<1x8x1xf32> to vector<1xf32>
    %30 = vector.shape_cast %29 : vector<1xf32> to vector<1x1x1xf32>
    %31 = vector.extract %30[0, 0, 0] : f32 from vector<1x1x1xf32>
    %32 = vector.broadcast %31 : f32 to vector<1x1xf32>
    %33 = vector.shape_cast %32 : vector<1x1xf32> to vector<1x1xf32>
    %34 = vector.broadcast %33 : vector<1x1xf32> to vector<8x128xf32>
    %c0_12 = arith.constant 0 : index
    %c0_13 = arith.constant 0 : index
    %35 = vector.load %arg5[%c0_12, %c0_13] : memref<8x128xf32, #tpu.memory_space<vmem>>, vector<8x128xf32>
    tpu.vector_store %arg5[%c0_12, %c0_13], %34 {strides = array<i32>} : memref<8x128xf32, #tpu.memory_space<vmem>>, vector<8x128xf32>,
    return
  }
  func.func @transform_0(%arg0: i32) -> (i32, i32) {
    %c0_i32 = arith.constant 0 : i32
    %c0_i32_0 = arith.constant 0 : i32
    return %arg0, %c0_i32 : i32, i32
  }
  func.func @transform_1(%arg0: i32) -> (i32, i32) {
    %c0_i32 = arith.constant 0 : i32
    %c0_i32_0 = arith.constant 0 : i32
    return %arg0, %c0_i32 : i32, i32
  }
  func.func @transform_2(%arg0: i32) -> (i32, i32) {
    %c0_i32 = arith.constant 0 : i32
    %c0_i32_0 = arith.constant 0 : i32
    %c0_i32_1 = arith.constant 0 : i32
    return %c0_i32, %c0_i32_0 : i32, i32
  }
  func.func @transform_3(%arg0: i32) -> (i32, i32) {
    %c0_i32 = arith.constant 0 : i32
    %c0_i32_0 = arith.constant 0 : i32
    return %arg0, %c0_i32 : i32, i32
  }
  func.func @transform_4(%arg0: i32) -> (i32, i32) {
    %c0_i32 = arith.constant 0 : i32
    %c0_i32_0 = arith.constant 0 : i32
    return %arg0, %c0_i32 : i32, i32
  }
}

</mosaic_0001>

<bundles_post_ra>
// kernel: tpu_custom_call.1
= control target key start
LH: loop header
LB: loop body
LE: loop exit
PB: predicated region body
PF: predicated region fallthrough
CT: control target
= control target key end

     0   :  { %9 = vsyncpa [#allocation3], 0  ;;  %s759_s0 = inlined_call_operand.vmem [shape: f32[10,32], index: 0, kind: input, shape index: {}]   ;;  %s760_s1 = inlined_call_operand.hbm [shape: f32[10,32], index: 1, kind: input, shape index: {}]   ;;  %s761_s2 = inlined_call_operand.vmem [shape: f32[1,32], index: 2, kind: input, shape index: {}]   ;;  %s762_s3 = inlined_call_operand.vmem [shape: f32[10,1], index: 3, kind: input, shape index: {}]   ;;  %s763_s4 = inlined_call_operand.hbm [shape: f32[16,128], index: 4, kind: output, shape index: {}]  }
   0x1   :  { %11 = vsyncpa [#allocation3 + $0x1], 0 }
   0x2   :  { %12 = vsyncpa [#allocation4], 0 }
   0x3   :  { %14 = vsyncpa [#allocation4 + $0x1], 0  ;;  %s596_s15 = smov 0   ;;  %s598_s16 = smov 0  }
   0x4   :  { %s600_s17 = smov 0   ;;  %s602_s18 = smov 0  }
   0x5 LB: > { %s617_s19 = sadd.s32 4294967295, %s566_s18   ;;  %s406_s20 = sadd.s32 4294967294, %s566_s18   ;;  %s566_s18 = sphi %s602_s18, %s780_s18   ;;  %s562_s17 = sphi %s600_s17, %s779_s17   ;;  %s558_s16 = sphi %s598_s16, %s778_s16   ;;  %s554_s15 = sphi %s596_s15, %s777_s15  }
   0x6   : > { %s621_s21 = sadd.s32 1, %s566_s18   ;;  %s53_s22 = sadd.s32 1, %s562_s17 }
   0x7   : > { %s50_s23 = ssub.s32 %s566_s18, %s621_s21  ;;  %p60_p0 = scmp.ne.s32.totalorder %s562_s17, %s558_s16 }
   0x8   : > { %p51_p1 = scmp.eq.s32.totalorder %s50_s23, 0  ;;  %p61_p2 = scmp.eq.s32.totalorder %s566_s18, 0 }
   0x9   : > { %p66_p3 = scmp.ne.s32.totalorder %s558_s16, %s554_s15  ;;  %p67_p4 = scmp.eq.s32.totalorder %s617_s19, 0 }
   0xa   : > { %s633_s24 = scalar_select %p51_p1, %s562_s17, %s53_s22  }
   0xb   : > { %p635_p5 = por %p61_p2, %p60_p0  ;;  %p639_p6 = por %p67_p4, %p66_p3 }
   0xc   : > { %p137_p7 = scmp.eq.s32.totalorder %s617_s19, 1  ;;  %p143_p8 = scmp.eq.s32.totalorder %s406_s20, 1 }
   0xd   : > { %s767_s26 = scalar_select %p639_p6, 1, 0 }
   0xe   : > { %p436_p10 = scmp.lt.s32.totalorder %s566_s18, 2  ;;  %p646_p11 = por %p137_p7, %p60_p0 }
   0xf   : > { %p650_p12 = por %p143_p8, %p66_p3  ;;  %s173_s29 = sand.u32 1, %s562_s17  }
  0x10   : > { %s768_s27 = scalar_select %p646_p11, 1, 0 }
  0x11   : > { %s769_s28 = scalar_select %p650_p12, 1, 0 }
  0x12   : > { %s410_s30 = sshll.u32 %s566_s18, 7  ;;  %s409_s5 = sshll.u32 %s173_s29, 3 }
  0x13   : > { %s659_s8 = scalar_lea.hbm %s760_s1, %s410_s30  ;;  %s177_s9 = scalar_lea.vmem [#allocation2], %s409_s5 }
  0x14   : > { %s184_s10 = sshll.u32 %s177_s9, 4  ;;  %p663_p13 = pnand %p436_p10, %p635_p5  ;;  %s667_s10 = int_to_ptr.vmem [resolvable:$true] %s184_s10 }
  0x15   : > { %s174_s12 = scalar_lea.sflag [#allocation3], %s173_s29  ;;  %s474_s13 = scalar_lea.hbm %s659_s8, 128 }
  0x16   : > { %p475_p2 = scmp.ne.s32.totalorder %s659_s8, %s474_s13  ;;  %p476_p3 = pneg %p663_p13 }
  0x17   : > { %s479_s22 = scalar_lea.hbm %s760_s1, 256  ;;  %p480_p5 = scmp.lt.s32.totalorder %s659_s8, %s760_s1 }
  0x18   : > { %p477_p4 = pnand %p476_p3, %p475_p2  ;;  %p481_p8 = scmp.lt.s32.totalorder %s479_s22, %s474_s13 }
  0x1a   : > { %p478_p7 = pneg %p477_p4  ;;  %p482_p10 = por %p481_p8, %p480_p5 }
  0x1c   : > { %p483_p9 = pnand %p482_p10, %p478_p7 }
  0x1e   : > { %486 = shalt.err (!%p483_p9)
}
  0x1f   : > { %s487_s29 = scalar_lea.vmem %s667_s10, 128  ;;  %s568_s30 = smov [#allocation2]  }
  0x20   : > { %p488_p0 = scmp.ne.s32.totalorder %s667_s10, %s487_s29  ;;  %s492_s5 = sshll.u32 %s568_s30, 4  ;;  %s493_s5 = int_to_ptr.vmem [resolvable:$false] %s492_s5 }
  0x21   : > { %s494_s6 = scalar_lea.vmem %s493_s5, 256  ;;  %p495_p4 = scmp.lt.s32.totalorder %s667_s10, %s493_s5 }
  0x22   : > { %p490_p1 = pnand %p488_p0, %p476_p3  ;;  %p496_p12 = scmp.lt.s32.totalorder %s494_s6, %s487_s29 }
  0x24   : > { %p491_p2 = pneg %p490_p1  ;;  %p497_p11 = por %p496_p12, %p495_p4 }
  0x26   : > { %p498_p6 = pnand %p497_p11, %p491_p2 }
  0x28   : > { %501 = shalt.err (!%p498_p6)
}
  0x29   : > { %431 = dma.hbm_to_vmem [thread:$0]  (!%p663_p13), %s659_s8, 128, %s667_s10, %s174_s12  }
  0x2a   : > { %p771_p9 = scmp.lt.s32.totalorder %s566_s18, 3  ;;  %p772_p7 = scmp.ge.s32.totalorder %s566_s18, 1 }
  0x2c   : > { %p197_p0 = pnand %p772_p7, %p771_p9 }
  0x2d   : > { %s694_s7 = sand.u32 (!%p197_p0), 1, %s558_s16   ;;  %p773_p6 = scmp.ne.s32.totalorder (!%p197_p0), %s767_s26, 0 }
  0x2e   : > { %200 = sbr.rel (%p197_p0) target bundleno = 548 (0x224), region = 36  ;;  %s412_s9 = sshll.u32 (!%p197_p0), %s694_s7, 3 }
  0x2f   : > { %s203_s13 = scalar_lea.sflag (!%p197_p0), [#allocation3], %s694_s7  ;;  %s206_s11 = scalar_lea.vmem (!%p197_p0), [#allocation2], %s412_s9 }
  0x33   : > { %545 = dma.done.wait (%p773_p6), %s203_s13, 128  }
  0x34   : > { %547 = vsyncadd (%p773_p6), %s203_s13, 4294967168  ;;  %p239_p11 = scmp.lt.s32.totalorder %s617_s19, 1  ;;  %v569_v0 = vmov 0   ;;  %v248_v3 = vld [vmem:[%s206_s11] sm:$0xff]  ;;  %vm252_vm0 = vcmask 261120   ;;  %v278_v13 = vlaneseq  ;;  %s417_s30 = sshll.u32 %s617_s19, 3 }
  0x35   : > { %471 = vset.pattern.permute.xlu0 %v569_v0  ;;  %v416_v7 = vld [vmem:[%s761_s2] ss:$0 sm:$0xff]  ;;  %v281_v15 = vstv %s417_s30  ;;  %vm285_vm2 = vcmask 7168   ;;  %s238_s5 = scalar_lea.vmem [#allocation5], %s412_s9  ;;  %s419_s13 = sshll.u32 %s617_s19, 7 }
  0x36   : > { %s240_s8 = scalar_select %p239_p11, %s617_s19, 1  ;;  %v279_v14 = vshrl.u32 %v278_v13, 7 }
  0x37   : > { %s312_s6 = sshll.u32 %s238_s5, 4  ;;  %s310_s12 = scalar_lea.hbm %s763_s4, %s419_s13  ;;  %s719_s6 = int_to_ptr.vmem [resolvable:$true] %s312_s6 }
  0x38   : > { %s414_s10 = sshll.u32 %s240_s8, 3  ;;  %v282_v18 = vadd.s32 %v281_v15, %v279_v14  ;;  %s299_s14 = scalar_lea.sflag [#allocation4], %s694_s7 }
  0x39   : > { %s246_s20 = scalar_lea.vmem %s762_s3, %s414_s10  ;;  %s242_s25 = scalar_lea.vmem %s759_s0, %s414_s10 }
  0x3a   : > { %v250_v1 = vld [vmem:[%s246_s20] sm:$0xff]  ;;  %vm283_vm1 = vcmp.lt.s32.totalorder %v282_v18, 10  ;;  %s502_s20 = scalar_lea.vmem %s719_s6, 128  ;;  %p774_p13 = scmp.ne.s32.totalorder %s768_s27, 0 }
  0x3b   : > { %258 = vperm.xlu0 %471, %v250_v1   ;;  %v247_v2 = vld [vmem:[%s242_s25] sm:$0xff]  ;;  %v273_v12 = vsub.f32 10.0, %v250_v1  ;;  %p503_p12 = scmp.ne.s32.totalorder %s719_s6, %s502_s20  ;;  %s570_s9 = smov [#allocation5]  }
  0x3c   : > { %v251_v4 = vmul.f32 %v248_v3, %v247_v2  ;;  %s506_s19 = sshll.u32 %s570_s9, 4  ;;  %s507_s19 = int_to_ptr.vmem [resolvable:$false] %s506_s19 }
  0x3d   : > { %472 = vrcp.f32 %v273_v12  ;;  %p504_p1 = pnand %p503_p12, %p774_p13  ;;  %s508_s22 = scalar_lea.vmem %s507_s19, 256 }
  0x3e   : > { %v253_v5 = vsel %vm252_vm0, %v251_v4, 0.0  ;;  %p509_p5 = scmp.lt.s32.totalorder %s719_s6, %s507_s19  ;;  %p510_p8 = scmp.lt.s32.totalorder %s508_s22, %s502_s20 }
  0x3f   : > { %p505_p3 = pneg %p504_p1 }
  0x40   : > { %p511_p10 = por %p510_p8, %p509_p5 }
  0x42   : > { %p512_p2 = pnand %p511_p10, %p505_p3 }
  0x4a   : > { %v473_v17 = vpop.eup %472 }
  0x5a   : > { %254 = vadd.xlane.f32.xlu0 %v253_v5 }
  0xb6   : > { %v259_v6 = vpop.permute.xlu0 %258 }
  0xb7   : > { %v261_v8 = vmul.f32 %v259_v6, %v248_v3 }
  0xb9   : > { %v268_v9 = vsub.f32 %v416_v7, %v261_v8 }
  0xbb   : > { %v269_v10 = vmul.f32 %v268_v9, %v247_v2 }
  0xbd   : > { %v270_v11 = vsel %vm252_vm0, %v269_v10, 0.0 }
  0xbe   : > { %271 = vadd.xlane.f32.xlu1 %v270_v11 }
  0xe3   : > { %v255_v16 = vpop.xlane.xlu0 %254 }
  0xe4   : > { %v274_v19 = vsub.f32 1.0, %v255_v16 }
 0x147   : > { %v272_v20 = vpop.xlane.xlu1 %271 }
 0x148   : > { %v276_v21 = vmul.f32 %v473_v17, %v272_v20 }
 0x14a   : > { %v277_v22 = vadd.f32 %v276_v21, %v274_v19 }
 0x14c   : > { %v284_v23 = vsel %vm283_vm1, %v277_v22, 0.0 }
 0x14d   : > { %v286_v24 = vsel %vm285_vm2, %v284_v23, 0.0 }
 0x14e   : > { %287 = vadd.xlane.f32.xlu1 %v286_v24 }
 0x1d7   : > { %v288_v25 = vpop.xlane.xlu1 %287 }
 0x1d8   : > { %v289_v26 = vrot.slane %v288_v25, 4 }
 0x1da   : > { %v290_v27 = vadd.f32 %v289_v26, %v288_v25 }
 0x1dc   : > { %v291_v28 = vrot.slane %v290_v27, 2 }
 0x1de   : > { %v292_v29 = vadd.f32 %v291_v28, %v290_v27 }
 0x1e0   : > { %v293_v30 = vrot.slane %v292_v29, 1 }
 0x1e2   : > { %v294_v31 = vadd.f32 %v293_v30, %v292_v29 }
 0x1e4   : > { %422 = vpush %v294_v31 }
 0x215   : > { %s423_s11 = spop %422 }
 0x216   : > { %v296_v32 = vstv %s423_s11 }
 0x217   : > { %297 = vst [vmem:[%s238_s5] sm:$0xff] %v296_v32 }
 0x218   : > { %515 = shalt.err (!%p512_p2)
}
 0x219   : > { %s516_s23 = scalar_lea.hbm %s310_s12, 128  ;;  %s520_s26 = scalar_lea.hbm %s763_s4, 256 }
 0x21a   : > { %p517_p4 = scmp.ne.s32.totalorder %s310_s12, %s516_s23  ;;  %p521_p0 = scmp.lt.s32.totalorder %s310_s12, %s763_s4 }
 0x21b   : > { %p522_p6 = scmp.lt.s32.totalorder %s520_s26, %s516_s23 }
 0x21c   : > { %p518_p9 = pnand %p517_p4, %p774_p13 }
 0x21d   : > { %p523_p11 = por %p522_p6, %p521_p0 }
 0x21e   : > { %p519_p7 = pneg %p518_p9 }
 0x220   : > { %p524_p12 = pnand %p523_p11, %p519_p7 }
 0x222   : > { %527 = shalt.err (!%p524_p12)
}
 0x223   : > { %426 = dma.vmem_to_hbm [thread:$0]  (%p774_p13), %s719_s6, 128, %s310_s12, %s299_s14  }
 0x224 PF: > { %s324_s5 = sand.u32 1, %s554_s15   ;;  %p775_p1 = scmp.ne.s32.totalorder %s769_s28, 0 }
 0x225   : > { %p776_p3 = scmp.ge.s32.totalorder %s566_s18, 2  ;;  %s325_s13 = scalar_lea.sflag [#allocation4], %s324_s5 }
 0x227   : > { %p433_p5 = pnand %p776_p3, %p775_p1 }
 0x229   : > { %p434_p8 = pneg %p433_p5 }
 0x22b   : > { %549 = dma.done.wait (%p434_p8), %s325_s13, 128  }
 0x22c   : > { %551 = vsyncadd (%p434_p8), %s325_s13, 4294967168  ;;  %p17_p10 = scmp.ge.s32.totalorder %s621_s21, 4   ;;  %s777_s15 = smov %s558_s16 }
 0x22d   : > { %s778_s16 = smov %s562_s17  ;;  %s779_s17 = smov %s633_s24 }
 0x22e   : > { %s780_s18 = smov %s621_s21  ;;  %19 = sbr.rel (!%p17_p10) target bundleno = 5 (0x5), region = 87 }
 0x233   :  { %330 = vsyncpa [#allocation3], 1 }
 0x234   :  { %332 = vsyncpa [#allocation3 + $0x1], 1 }
 0x235   :  { %333 = vsyncpa [#allocation4], 1 }
 0x236   :  { %335 = vsyncpa [#allocation4 + $0x1], 1 }

</bundles_post_ra>
